<compile_context>
chip_gen: v6e
topology: v6e:2x2x1
jax: 0.10.0
libtpu: 0.0.40
codegen_flags: <defaults>
</compile_context>

<pallas_src>
import jax
import jax.numpy as jnp
import numpy as np
from jax.experimental import pallas as pl
from jax.experimental.pallas import tpu as pltpu


def _fusion_matmul_kernel(w_ref, x_ref, o_ref):
    """Tiled matmul with accumulation into the resident f32 output block.

    grid = (M/tm, N/tn, K/tk) with K ("arbitrary") last.
    w_ref : (tm, tk) bf16   x_ref : (tk, tn) bf16   o_ref : (tm, tn) f32
    """
    @pl.when(pl.program_id(2) == 0)
    def _():
        o_ref[...] = jnp.zeros_like(o_ref)

    o_ref[...] += jnp.dot(w_ref[...], x_ref[...],
                          preferred_element_type=jnp.float32)


def _pick_tile(dim, cap, mult):
    """Largest legal tile: full extent if it fits under `cap`, otherwise the
    largest divisor of `dim` that is <= cap and a multiple of `mult`."""
    if dim <= cap:
        return dim
    t = (cap // mult) * mult
    while t >= mult:
        if dim % t == 0:
            return t
        t -= mult
    return dim  # fall back to full extent (always legal)


def mf_fusion(weights, x_stacked, *, compute_dtype=jnp.bfloat16):
    """weights: (scales, seq, seq); x_stacked: (scales, batch, D, seq).

    Returns out: (batch, seq, D) = sum_i weights[i] @ x_stacked[i, b].T
    """
    scales, seq, seq_k = weights.shape
    assert seq_k == seq
    scales2, batch, D, seq2 = x_stacked.shape
    assert scales2 == scales and seq2 == seq

    M = seq
    K = scales * seq
    N = batch * D

    # Layout plumbing in the wrapper (XLA), so the kernel sees a plain matmul:
    #   w2[m, i*seq + k]       = weights[i, m, k]          -> (M, K)
    #   x2[i*seq + k, b*D + d] = x_stacked[i, b, d, k]     -> (K, N)
    w2 = jnp.transpose(weights, (1, 0, 2)).reshape(M, K).astype(compute_dtype)
    x2 = jnp.transpose(x_stacked, (0, 3, 1, 2)).reshape(K, N).astype(compute_dtype)

    # Tile caps sized for the v7x 32 MiB scoped-VMEM budget (double-buffered
    # bf16 inputs + resident f32 output block stay well under it).
    tm = _pick_tile(M, 512, 16)    # bf16 sublane granularity
    tk = _pick_tile(K, 512, 16)
    tn = _pick_tile(N, 1024, 128)  # lane granularity

    grid = (M // tm, N // tn, K // tk)

    out2 = pl.pallas_call(
        _fusion_matmul_kernel,
        out_shape=jax.ShapeDtypeStruct((M, N), jnp.float32),
        grid_spec=pltpu.PrefetchScalarGridSpec(
            num_scalar_prefetch=0,
            grid=grid,
            in_specs=[
                pl.BlockSpec((tm, tk), lambda i, j, k: (i, k)),
                pl.BlockSpec((tk, tn), lambda i, j, k: (k, j)),
            ],
            out_specs=pl.BlockSpec((tm, tn), lambda i, j, k: (i, j)),
        ),
        compiler_params=pltpu.CompilerParams(
            dimension_semantics=("parallel", "parallel", "arbitrary"),
        ),
    )(w2, x2)

    # (seq, batch*D) -> (batch, seq, D), matching the PyTorch output layout.
    out = jnp.transpose(out2.reshape(M, batch, D), (1, 0, 2))
    return out.astype(x_stacked.dtype)


def xavier_normal(key, shape):
    # nn.init.xavier_normal_ on a (scales, seq, seq) tensor:
    # fan_in = fan_out = seq  ->  std = sqrt(2 / (seq + seq)) = sqrt(1 / seq)
    fan_in, fan_out = shape[-1], shape[-2]
    std = float(np.sqrt(2.0 / (fan_in + fan_out)))
    return std * jax.random.normal(key, shape, dtype=jnp.float32)


if __name__ == "__main__":
    # Small shapes consistent with the module's forward.
    scales, batch, D, seq = 3, 2, 16, 8

    key = jax.random.PRNGKey(0)
    k_w, k_x = jax.random.split(key)

    weights = xavier_normal(k_w, (scales, seq, seq))           # (scales, seq, seq)
    x_stacked = jax.random.normal(k_x, (scales, batch, D, seq),
                                  dtype=jnp.float32)           # inputs[i]: (B, D, S)

    out = mf_fusion(weights, x_stacked)
    out = jax.block_until_ready(out)

    # Reference with identical bf16-quantized operands and f32 accumulation.
    ref = jnp.einsum(
        "isk,ibdk->bsd",
        weights.astype(jnp.bfloat16),
        x_stacked.astype(jnp.bfloat16),
        preferred_element_type=jnp.float32,
    )
    np.testing.assert_allclose(np.asarray(out), np.asarray(ref),
                               rtol=1e-4, atol=1e-4)

    # Sanity check against the full-f32 reference (bf16 quantization tolerance).
    ref_f32 = jnp.einsum("isk,ibdk->bsd", weights, x_stacked)
    np.testing.assert_allclose(np.asarray(out), np.asarray(ref_f32),
                               rtol=3e-2, atol=3e-2)

    print("KERNEL_OK")
</pallas_src>

<mosaic_0001>
module attributes {stable_mosaic.version = 11 : i64} {
  func.func @_fusion_matmul_kernel(%arg0: i32, %arg1: i32, %arg2: i32, %arg3: memref<8x24xbf16, #tpu.memory_space<vmem>>, %arg4: memref<24x32xbf16, #tpu.memory_space<vmem>>, %arg5: memref<8x32xf32, #tpu.memory_space<vmem>>) attributes {dimension_semantics = [#tpu.dimension_semantics<parallel>, #tpu.dimension_semantics<parallel>, #tpu.dimension_semantics<arbitrary>], iteration_bounds = array<i64: 1, 1, 1>, scalar_prefetch = 0 : i64, scratch_operands = 0 : i64, tpu.core_type = #tpu.core_type<tc>, window_params = [{transform_indices = @transform_0, window_bounds = array<i64: 8, 24>}, {transform_indices = @transform_1, window_bounds = array<i64: 24, 32>}, {transform_indices = @transform_2, window_bounds = array<i64: 8, 32>}]} {
    %c0_i32 = arith.constant 0 : i32
    %0 = arith.cmpi eq, %arg2, %c0_i32 : i32
    %1 = arith.extui %0 : i1 to i32
    %c0_i32_0 = arith.constant 0 : i32
    %2 = arith.cmpi ne, %1, %c0_i32_0 : i32
    scf.if %2 {
      %cst_8 = arith.constant 0.000000e+00 : f32
      %9 = vector.broadcast %cst_8 : f32 to vector<8x32xf32>
      %c0_9 = arith.constant 0 : index
      %c0_10 = arith.constant 0 : index
      %10 = vector.load %arg5[%c0_9, %c0_10] : memref<8x32xf32, #tpu.memory_space<vmem>>, vector<8x32xf32>
      tpu.vector_store %arg5[%c0_9, %c0_10], %9 {strides = array<i32>} : memref<8x32xf32, #tpu.memory_space<vmem>>, vector<8x32xf32>,
    } else {
    }
    %c0 = arith.constant 0 : index
    %c0_1 = arith.constant 0 : index
    %3 = vector.load %arg5[%c0, %c0_1] : memref<8x32xf32, #tpu.memory_space<vmem>>, vector<8x32xf32>
    %c0_2 = arith.constant 0 : index
    %c0_3 = arith.constant 0 : index
    %4 = vector.load %arg3[%c0_2, %c0_3] : memref<8x24xbf16, #tpu.memory_space<vmem>>, vector<8x24xbf16>
    %c0_4 = arith.constant 0 : index
    %c0_5 = arith.constant 0 : index
    %5 = vector.load %arg4[%c0_4, %c0_5] : memref<24x32xbf16, #tpu.memory_space<vmem>>, vector<24x32xbf16>
    %cst = arith.constant dense<0.000000e+00> : vector<8x32xf32>
    %6 = tpu.matmul %4, %5, %cst {dimension_numbers = #tpu.dot_dimension_numbers<[1], [0], [0], [1], [0, 0, 1, 1], [], []>} : vector<8x24xbf16>, vector<24x32xbf16>, vector<8x32xf32> -> vector<8x32xf32>
    %7 = arith.addf %3, %6 : vector<8x32xf32>
    %c0_6 = arith.constant 0 : index
    %c0_7 = arith.constant 0 : index
    %8 = vector.load %arg5[%c0_6, %c0_7] : memref<8x32xf32, #tpu.memory_space<vmem>>, vector<8x32xf32>
    tpu.vector_store %arg5[%c0_6, %c0_7], %7 {strides = array<i32>} : memref<8x32xf32, #tpu.memory_space<vmem>>, vector<8x32xf32>,
    return
  }
  func.func @transform_0(%arg0: i32, %arg1: i32, %arg2: i32) -> (i32, i32) {
    %c0_i32 = arith.constant 0 : i32
    return %arg0, %arg2 : i32, i32
  }
  func.func @transform_1(%arg0: i32, %arg1: i32, %arg2: i32) -> (i32, i32) {
    %c0_i32 = arith.constant 0 : i32
    return %arg2, %arg1 : i32, i32
  }
  func.func @transform_2(%arg0: i32, %arg1: i32, %arg2: i32) -> (i32, i32) {
    %c0_i32 = arith.constant 0 : i32
    return %arg0, %arg1 : i32, i32
  }
}

</mosaic_0001>

<bundles_post_ra>
// kernel: tpu_custom_call.1
= control target key start
LH: loop header
LB: loop body
LE: loop exit
PB: predicated region body
PF: predicated region fallthrough
CT: control target
= control target key end

     0   :  { %7 = vsyncpa [#allocation3], 0  ;;  %s248_s0 = inlined_call_operand.hbm [shape: bf16[8,24], index: 0, kind: input, shape index: {}]   ;;  %s249_s1 = inlined_call_operand.hbm [shape: bf16[24,32], index: 1, kind: input, shape index: {}]   ;;  %s250_s2 = inlined_call_operand.hbm [shape: f32[8,32], index: 2, kind: output, shape index: {}]  }
   0x1   :  { %8 = vsyncpa [#allocation6], 0 }
   0x2   :  { %9 = vsyncpa [#allocation4], 0  ;;  %s215_s9 = smov [#allocation2]   ;;  %s216_s11 = smov [#allocation5]  }
   0x3   :  { %s16_s10 = sshll.u32 %s215_s9, 4  ;;  %s25_s12 = sshll.u32 %s216_s11, 4  ;;  %s17_s10 = int_to_ptr.vmem [resolvable:$true] %s16_s10  ;;  %s26_s12 = int_to_ptr.vmem [resolvable:$true] %s25_s12 }
   0x4   :  { %s157_s13 = scalar_lea.vmem %s17_s10, 64  ;;  %p162_p1 = scmp.lt.s32.totalorder %s17_s10, %s17_s10 }
   0x5   :  { %p158_p0 = scmp.ne.s32.totalorder %s17_s10, %s157_s13  ;;  %p163_p2 = scmp.lt.s32.totalorder %s157_s13, %s157_s13 }
   0x7   :  { %p164_p3 = por %p163_p2, %p162_p1 }
   0x9   :  { %p165_p4 = pnand %p164_p3, %p158_p0 }
   0xb   :  { %168 = shalt.err (!%p165_p4)
}
   0xc   :  { %19 = dma.hbm_to_vmem [thread:$0]  %s248_s0, 64, %s17_s10, [#allocation3]  }
   0xd   :  { %s177_s16 = scalar_lea.vmem %s26_s12, 192  ;;  %p182_p6 = scmp.lt.s32.totalorder %s26_s12, %s26_s12 }
   0xe   :  { %p178_p5 = scmp.ne.s32.totalorder %s26_s12, %s177_s16  ;;  %p183_p7 = scmp.lt.s32.totalorder %s177_s16, %s177_s16 }
  0x10   :  { %p184_p8 = por %p183_p7, %p182_p6 }
  0x12   :  { %p185_p9 = pnand %p184_p8, %p178_p5 }
  0x14   :  { %188 = shalt.err (!%p185_p9)
}
  0x15   :  { %s217_s17 = smov 64   ;;  %s218_s18 = smov 4  }
  0x16   :  { %31 = dma.hbm_to_vmem [thread:$0]  %s249_s1, 192, %s26_s12, [#allocation6], %s217_s17, %s217_s17, %s218_s18  }
  0x17   :  { %209 = dma.done.wait [#allocation3], 64  }
  0x18   :  { %210 = vsyncadd [#allocation3], 4294967232 }
  0x19   :  { %211 = dma.done.wait [#allocation6], 192  }
  0x1a   :  { %212 = vsyncadd [#allocation6], 4294967104  ;;  %vm43_vm0 = vcmask 261120   ;;  %v219_v0 = vmov 0.0   ;;  %vm220_vm1 = vmmov 0   ;;  %vm63_vm2 = vcmask 1043456  }
  0x1b   :  { %44 = vst.msk [vmem:[#allocation7] sm:$0xff] %vm43_vm0, %v219_v0  ;;  %132 = vmatprep.subr.bf16.mxu0 %v219_v0  ;;  %136 = vmatprep.mubr.msk.bf16.mxu0 %vm220_vm1, %v219_v0  ;;  %v147_v1 = vld [vmem:[#allocation5 + $0x8] ss:$0 sps:$4 sm:$0xff]   ;;  %v148_v3 = vld [vmem:[#allocation5] sm:$0xff]   ;;  %v46_v4 = vld [vmem:[#allocation2] sm:$0xf] }
  0x1c   :  { %v65_v2 = vsel %vm63_vm2, %v147_v1, 0  ;;  %vm59_vm3 = vcmask 195584   ;;  %s221_s0 = smov [#allocation7]  }
  0x1d   :  { %133 = vmatpush3.bf16.msra.mxu0 %v65_v2  ;;  %s116_s1 = sshll.u32 %s221_s0, 4  ;;  %s117_s1 = int_to_ptr.vmem [resolvable:$true] %s116_s1 }
  0x1e   :  { %134 = vmatprep.subr.bf16.mxu0 %v219_v0  ;;  %s189_s21 = scalar_lea.vmem %s117_s1, 128  ;;  %p194_p11 = scmp.lt.s32.totalorder %s117_s1, %s117_s1 }
  0x1f   :  { %p190_p10 = scmp.ne.s32.totalorder %s117_s1, %s189_s21  ;;  %p195_p12 = scmp.lt.s32.totalorder %s189_s21, %s189_s21 }
  0x21   :  { %135 = vmatpush3.bf16.msra.mxu0 %v148_v3  ;;  %p196_p13 = por %p195_p12, %p194_p11 }
  0x22   :  { %v45_v5 = vld [vmem:[#allocation7] sm:$0xff] }
  0x23   :  { %p197_p0 = pnand %p196_p13, %p190_p10 }
  0x24   :  { %137 = vmatmul.mubr.msk.bf16.vlgmr.msra.gmra.mxu0 %vm59_vm3, %v46_v4 }
  0xe4   :  { %v101_v6 = vpop.f32.mrf.mxu0 }
  0xe5   :  { %v107_v7 = vadd.f32 %v101_v6, %v45_v5 }
  0xe6   :  { %v138_v8 = vpop.f32.mrf.mxu0 }
  0xe7   :  { %109 = vst.msk [vmem:[#allocation7] sm:$0xff] %vm43_vm0, %v107_v7 }
  0xe8   :  { %v104_v9 = vpop.f32.mrf.mxu0 }
  0xe9   :  { %200 = shalt.err (!%p197_p0)
}
  0xea   :  { %119 = dma.vmem_to_hbm [thread:$0]  %s117_s1, 128, %s250_s2, [#allocation4]   ;;  %v139_v10 = vpop.f32.mrf.mxu0 }
  0xeb   :  { %213 = dma.done.wait [#allocation4], 128  }
  0xec   :  { %214 = vsyncadd [#allocation4], 4294967168 }
  0xed   :  { %123 = vsyncpa [#allocation3], 1 }
  0xee   :  { %124 = vsyncpa [#allocation6], 1 }
  0xef   :  { %125 = vsyncpa [#allocation4], 1 }

</bundles_post_ra>
